<compile_context>
chip_gen: v7x
topology: tpu7x:2x2x1
jax: 0.10.0
libtpu: 0.0.40
codegen_flags: <defaults>
</compile_context>

<pallas_src>
import jax
import jax.numpy as jnp
from jax.experimental import pallas as pl
from jax.experimental.pallas import tpu as pltpu


_MIN_CHUNK_BYTES = 1 << 20  # only split the copy once each chunk is >= 1 MiB


def _make_dma_copy_kernel(chunk_bounds):
    """Kernel that copies the whole input ref to the output ref via HBM->HBM DMAs."""

    def kernel(x_hbm, o_hbm, sems):
        copies = [
            pltpu.make_async_copy(
                x_hbm.at[pl.ds(start, size)],
                o_hbm.at[pl.ds(start, size)],
                sems.at[c],
            )
            for c, (start, size) in enumerate(chunk_bounds)
        ]
        # Issue all DMAs back-to-back (lets multiple DMA engines overlap), then wait.
        for cp in copies:
            cp.start()
        for cp in copies:
            cp.wait()

    return kernel


def blank_dropout(x: jax.Array, p: float = 0.0, materialize: bool = False) -> jax.Array:
    """Identity pass-through matching BlankDropout.forward.

    `p` is accepted for API compatibility and ignored (the module never drops).

    materialize=False (default): return x directly — no kernel, no HBM traffic.
    materialize=True: produce a fresh output buffer via direct HBM->HBM DMA on
    the native layout (no reshape, no VMEM staging, works for any shape/size).
    """
    if not materialize:
        return x

    if x.size == 0 or x.ndim == 0:
        # Nothing to DMA-chunk; identity semantics are preserved either way.
        return x

    itemsize = jnp.dtype(x.dtype).itemsize
    total_bytes = x.size * itemsize
    lead = x.shape[0]

    # Split along the leading dim into a few near-equal static chunks so
    # multiple DMA engines can overlap; single DMA for small arrays.
    n_chunks = max(1, min(8, lead, total_bytes // _MIN_CHUNK_BYTES))
    base, rem = divmod(lead, n_chunks)
    chunk_bounds = []
    start = 0
    for c in range(n_chunks):
        size = base + (1 if c < rem else 0)
        if size > 0:
            chunk_bounds.append((start, size))
        start += size

    return pl.pallas_call(
        _make_dma_copy_kernel(chunk_bounds),
        out_shape=jax.ShapeDtypeStruct(x.shape, x.dtype),
        in_specs=[pl.BlockSpec(memory_space=pl.ANY)],
        out_specs=pl.BlockSpec(memory_space=pl.ANY),
        scratch_shapes=[pltpu.SemaphoreType.DMA((len(chunk_bounds),))],
        cost_estimate=pl.CostEstimate(
            flops=0, transcendentals=0, bytes_accessed=2 * total_bytes
        ),
    )(x)


if __name__ == "__main__":
    key = jax.random.PRNGKey(0)
    # NCHW, small shapes consistent with a conv-style model input.
    x = jax.random.normal(key, (2, 4, 16, 16), dtype=jnp.float32)

    # Default (optimal) path: pure identity, zero data movement.
    y_fast = blank_dropout(x, p=0.0)

    # Materialized path: direct HBM->HBM DMA copy on the native layout.
    y_copy = jax.block_until_ready(blank_dropout(x, p=0.0, materialize=True))

    assert y_fast.shape == x.shape and y_fast.dtype == x.dtype
    assert y_copy.shape == x.shape and y_copy.dtype == x.dtype
    assert jnp.array_equal(y_fast, x)
    assert jnp.array_equal(y_copy, x)

    # Ragged element count (not divisible by 128): previously fell back to a
    # non-materialized return; the DMA path handles it natively.
    key2 = jax.random.PRNGKey(1)
    x_ragged = jax.random.normal(key2, (3, 5, 7), dtype=jnp.float32)
    y_ragged = jax.block_until_ready(blank_dropout(x_ragged, materialize=True))
    assert jnp.array_equal(y_ragged, x_ragged)

    print("KERNEL_OK")
</pallas_src>

<mosaic_0001>
module attributes {stable_mosaic.version = 11 : i64} {
  func.func @kernel(%arg0: memref<2x4x16x16xf32, #tpu.memory_space<any>>, %arg1: memref<2x4x16x16xf32, #tpu.memory_space<any>>, %arg2: memref<1x!tpu.dma_semaphore, #tpu.memory_space<semaphore_mem>>) attributes {dimension_semantics = [], scalar_prefetch = 0 : i64, scratch_operands = 1 : i64, tpu.core_type = #tpu.core_type<tc>} {
    %c0_i32 = arith.constant 0 : i32
    %c0_i32_0 = arith.constant 0 : i32
    %c0_i32_1 = arith.constant 0 : i32
    %c0_i32_2 = arith.constant 0 : i32
    %c0_i32_3 = arith.constant 0 : i32
    %0 = tpu.memref_slice %arg0[%c0_i32_0, %c0_i32_1, %c0_i32_2, %c0_i32_3] : memref<2x4x16x16xf32, #tpu.memory_space<any>> -> memref<2x4x16x16xf32, #tpu.memory_space<any>>
    %c0_i32_4 = arith.constant 0 : i32
    %c0_i32_5 = arith.constant 0 : i32
    %c0_i32_6 = arith.constant 0 : i32
    %c0_i32_7 = arith.constant 0 : i32
    %1 = tpu.memref_slice %arg1[%c0_i32_4, %c0_i32_5, %c0_i32_6, %c0_i32_7] : memref<2x4x16x16xf32, #tpu.memory_space<any>> -> memref<2x4x16x16xf32, #tpu.memory_space<any>>
    %2 = tpu.memref_slice %arg2[%c0_i32] : memref<1x!tpu.dma_semaphore, #tpu.memory_space<semaphore_mem>> -> memref<1x!tpu.dma_semaphore, #tpu.memory_space<semaphore_mem>>
    %3 = tpu.memref_squeeze %2 : memref<1x!tpu.dma_semaphore, #tpu.memory_space<semaphore_mem>> -> memref<!tpu.dma_semaphore, #tpu.memory_space<semaphore_mem>>
    tpu.enqueue_dma source(%0 : memref<2x4x16x16xf32, #tpu.memory_space<any>>) target(%1 : memref<2x4x16x16xf32, #tpu.memory_space<any>>) target_semaphore(%3 : memref<!tpu.dma_semaphore, #tpu.memory_space<semaphore_mem>>)
    %c0_i32_8 = arith.constant 0 : i32
    %c0_i32_9 = arith.constant 0 : i32
    %c0_i32_10 = arith.constant 0 : i32
    %c0_i32_11 = arith.constant 0 : i32
    %c0_i32_12 = arith.constant 0 : i32
    %4 = tpu.memref_slice %arg0[%c0_i32_9, %c0_i32_10, %c0_i32_11, %c0_i32_12] : memref<2x4x16x16xf32, #tpu.memory_space<any>> -> memref<2x4x16x16xf32, #tpu.memory_space<any>>
    %c0_i32_13 = arith.constant 0 : i32
    %c0_i32_14 = arith.constant 0 : i32
    %c0_i32_15 = arith.constant 0 : i32
    %c0_i32_16 = arith.constant 0 : i32
    %5 = tpu.memref_slice %arg1[%c0_i32_13, %c0_i32_14, %c0_i32_15, %c0_i32_16] : memref<2x4x16x16xf32, #tpu.memory_space<any>> -> memref<2x4x16x16xf32, #tpu.memory_space<any>>
    %6 = tpu.memref_slice %arg2[%c0_i32_8] : memref<1x!tpu.dma_semaphore, #tpu.memory_space<semaphore_mem>> -> memref<1x!tpu.dma_semaphore, #tpu.memory_space<semaphore_mem>>
    %7 = tpu.memref_squeeze %6 : memref<1x!tpu.dma_semaphore, #tpu.memory_space<semaphore_mem>> -> memref<!tpu.dma_semaphore, #tpu.memory_space<semaphore_mem>>
    tpu.wait_dma2 semaphore(%7 : memref<!tpu.dma_semaphore, #tpu.memory_space<semaphore_mem>>) src(%4 : memref<2x4x16x16xf32, #tpu.memory_space<any>>) dst(%5 : memref<2x4x16x16xf32, #tpu.memory_space<any>>)
    return
  }
}

</mosaic_0001>

<bundles_post_ra>
// kernel: tpu_custom_call.1
= control target key start
LH: loop header
LB: loop body
LE: loop exit
PB: predicated region body
PF: predicated region fallthrough
CT: control target
= control target key end

     0   :  { %s36_s6 = smov [#allocation2]   ;;  %s37_s7 = smov [#allocation3]   ;;  %s55_s0 = inlined_call_operand.hbm [shape: f32[2,4,16,16], index: 0, kind: input, shape index: {}]   ;;  %s56_s1 = inlined_call_operand.hbm [shape: f32[2,4,16,16], index: 1, kind: output, shape index: {}]  }
   0x1   :  { %s38_s8 = smov 0  }
   0x2   :  { %18 = dma.general %s55_s0, 2048, %s56_s1, %s36_s6, %s37_s7, [#allocation4], %s38_s8, 0  }
   0x3   :  { %34 = dma.done.wait [#allocation2], 2048 }
   0x4   :  { %35 = vsyncadd [#allocation2], 4294965248 }
   0x5   :  { %24 = vsyncmov [#allocation2] }
   0x8   :  { %s25_s13 = vpop.sfrf %24 }
   0x9   :  { %p30_p0 = scmp.ne.s32.totalorder %s25_s13, 0 }
   0xb   :  { %29 = shalt.err (%p30_p0)  }

</bundles_post_ra>
